<compile_context>
chip_gen: v7x
topology: tpu7x:2x2x1
jax: 0.10.0
libtpu: 0.0.40
codegen_flags: <defaults>
</compile_context>

<pallas_src>
import functools

import jax
import jax.numpy as jnp
from jax.experimental import pallas as pl
from jax.experimental.pallas import tpu as pltpu


def _focus_conv_kernel(x_ref, w_ref, b_ref, o_ref, *, apply_act):
    # x_ref: (1, K, Ts)  space-to-depth input tile (K = 4*C1, flat spatial on lanes)
    # w_ref: (C2, K)     BN-folded 1x1 conv weight (constant index_map -> VMEM resident)
    # b_ref: (C2, 1)     BN-folded bias
    # o_ref: (1, C2, Ts) output tile (lane-dense spatial)
    y = jnp.dot(w_ref[...], x_ref[0], preferred_element_type=jnp.float32)  # (C2, Ts)
    y = y + b_ref[...]
    if apply_act:
        y = y * (1.0 / (1.0 + jnp.exp(-y)))            # exact SiLU (exp -> EUP slot)
    o_ref[0] = y.astype(o_ref.dtype)


def _pick_spatial_tile(S, K, C2, itemsize, batch):
    """Lane tile: full extent for small S, else a 128-multiple sized for ~3 MB/step."""
    if S <= 256:
        return S                                      # full-extent block (always legal)
    target = (3 << 20) // max((K + C2) * itemsize, 1)  # ~3 MB of in+out tile bytes/step
    ts = min(int(target), 16384, S)
    ts = max(ts - ts % 128, 128)
    if batch == 1:
        # Guarantee >= 2 spatial grid steps so v7x megacore can split the work.
        half = (S // 2) // 128 * 128
        if half >= 128:
            ts = min(ts, half)
    return ts


@functools.partial(jax.jit, static_argnames=("act",))
def focus_forward(x, w_eff, b_eff, *, act=True):
    B, C1, H, W = x.shape
    assert H % 2 == 0 and W % 2 == 0, "Focus needs even spatial dims"
    Ho, Wo = H // 2, W // 2
    K = 4 * C1
    C2 = w_eff.shape[0]
    S = Ho * Wo

    # Space-to-depth == torch.cat([x[...,::2,::2], x[...,1::2,::2],
    #                              x[...,::2,1::2], x[...,1::2,1::2]], 1)
    # channel index = (2*wm + hm)*C1 + c; one fused XLA reshape+transpose (see TODO).
    x_s2d = (
        x.reshape(B, C1, Ho, 2, Wo, 2)
        .transpose(0, 5, 3, 1, 2, 4)        # (b, wm, hm, c, ho, wo)
        .reshape(B, K, S)
    )

    itemsize = jnp.dtype(x.dtype).itemsize
    Ts = _pick_spatial_tile(S, K, C2, itemsize, B)
    grid = (B, pl.cdiv(S, Ts))              # ragged last block is masked by Pallas

    # VMEM: double-buffered in/out tiles + resident (double-buffered) params, capped
    # well under v7x's 64 MiB per-TensorCore budget.
    tile_bytes = (K + C2) * Ts * itemsize
    params_bytes = C2 * (K + 1) * 4
    est = 2 * tile_bytes + 2 * params_bytes
    vmem_limit = int(min(max(4 * est, 16 << 20), 32 << 20))

    kernel = functools.partial(_focus_conv_kernel, apply_act=act)
    out = pl.pallas_call(
        kernel,
        out_shape=jax.ShapeDtypeStruct((B, C2, S), x.dtype),
        grid_spec=pltpu.PrefetchScalarGridSpec(
            num_scalar_prefetch=0,
            grid=grid,
            in_specs=[
                pl.BlockSpec((1, K, Ts), lambda b, s: (b, 0, s)),
                pl.BlockSpec((C2, K), lambda b, s: (0, 0)),
                pl.BlockSpec((C2, 1), lambda b, s: (0, 0)),
            ],
            out_specs=pl.BlockSpec((1, C2, Ts), lambda b, s: (b, 0, s)),
        ),
        compiler_params=pltpu.CompilerParams(
            dimension_semantics=("parallel", "parallel"),
            vmem_limit_bytes=vmem_limit,
        ),
    )(x_s2d, w_eff, b_eff)
    return out.reshape(B, C2, Ho, Wo)


class Focus:
    """Pallas equivalent of yolov5 Focus (space-to-depth -> Conv 1x1 -> BN -> SiLU)."""

    def __init__(self, c1, c2, k=1, s=1, p=None, g=1, act=True,
                 key=jax.random.PRNGKey(0), eps=1e-5):
        # TODO(synk): only the Focus defaults of the inner Conv (k=1, s=1, p=autopad->0,
        # g=1) are implemented; general k/s/g has no clean mapping in this kernel.
        assert k == 1 and s == 1 and (p is None or p == 0) and g == 1
        self.c1, self.c2, self.act, self.eps = c1, c2, bool(act), eps
        kw, kg, kb, km, kv = jax.random.split(key, 5)
        fan_in = 4 * c1
        bound = 1.0 / float(fan_in) ** 0.5
        # Conv2d(4*c1, c2, 1, bias=False) weight, stored as (c2, 4*c1).
        self.w_conv = jax.random.uniform(kw, (c2, 4 * c1), jnp.float32, -bound, bound)
        # BatchNorm2d(c2) affine params + running statistics (eval mode).
        # TODO(synk): training-mode BN (batch statistics / stat updates) is not implemented.
        self.gamma = jax.random.uniform(kg, (c2,), jnp.float32, 0.5, 1.5)
        self.beta = 0.1 * jax.random.normal(kb, (c2,), jnp.float32)
        self.running_mean = 0.1 * jax.random.normal(km, (c2,), jnp.float32)
        self.running_var = jax.random.uniform(kv, (c2,), jnp.float32, 0.5, 1.5)
        # Fold BN into the conv: y = (Wx - mean)*scale + beta = (W*scale)x + (beta - mean*scale)
        scale = self.gamma / jnp.sqrt(self.running_var + eps)
        self.w_eff = self.w_conv * scale[:, None]                      # (c2, 4*c1)
        self.b_eff = (self.beta - self.running_mean * scale)[:, None]  # (c2, 1)

    def __call__(self, x):
        return focus_forward(x, self.w_eff, self.b_eff, act=self.act)


if __name__ == "__main__":
    key = jax.random.PRNGKey(0)
    kx, kp = jax.random.split(key)
    B, C1, C2, H, W = 2, 4, 8, 16, 16
    x = jax.random.normal(kx, (B, C1, H, W), jnp.float32)      # NCHW, like PyTorch

    model = Focus(C1, C2, key=kp)
    y = jax.block_until_ready(model(x))
    assert y.shape == (B, C2, H // 2, W // 2), y.shape

    # Plain-JAX reference following the PyTorch module exactly (unfolded BN).
    xc = jnp.concatenate(
        [x[..., ::2, ::2], x[..., 1::2, ::2], x[..., ::2, 1::2], x[..., 1::2, 1::2]],
        axis=1)                                                 # (B, 4*C1, Ho, Wo)
    conv = jnp.einsum("bkhw,ok->bohw", xc, model.w_conv)
    scale = model.gamma / jnp.sqrt(model.running_var + model.eps)
    bn = (conv - model.running_mean[None, :, None, None]) * scale[None, :, None, None] \
        + model.beta[None, :, None, None]
    ref = bn * jax.nn.sigmoid(bn)
    err = float(jnp.abs(y - ref).max())
    assert jnp.allclose(y, ref, atol=1e-4, rtol=1e-4), err

    print("KERNEL_OK")
</pallas_src>

<mosaic_0001>
module attributes {stable_mosaic.version = 11 : i64} {
  func.func @_focus_conv_kernel(%arg0: i32, %arg1: i32, %arg2: memref<1x16x64xf32, #tpu.memory_space<vmem>>, %arg3: memref<8x16xf32, #tpu.memory_space<vmem>>, %arg4: memref<8x1xf32, #tpu.memory_space<vmem>>, %arg5: memref<1x8x64xf32, #tpu.memory_space<vmem>>) attributes {dimension_semantics = [#tpu.dimension_semantics<parallel>, #tpu.dimension_semantics<parallel>], iteration_bounds = array<i64: 2, 1>, scalar_prefetch = 0 : i64, scratch_operands = 0 : i64, tpu.core_type = #tpu.core_type<tc>, window_params = [{transform_indices = @transform_0, window_bounds = array<i64: 1, 16, 64>}, {pipeline_mode = #tpu.pipeline_mode<synchronous>, transform_indices = @transform_1, window_bounds = array<i64: 8, 16>}, {pipeline_mode = #tpu.pipeline_mode<synchronous>, transform_indices = @transform_2, window_bounds = array<i64: 8, 1>}, {transform_indices = @transform_3, window_bounds = array<i64: 1, 8, 64>}]} {
    %c0 = arith.constant 0 : index
    %c0_0 = arith.constant 0 : index
    %0 = vector.load %arg3[%c0, %c0_0] : memref<8x16xf32, #tpu.memory_space<vmem>>, vector<8x16xf32>
    %c0_1 = arith.constant 0 : index
    %c0_2 = arith.constant 0 : index
    %c0_3 = arith.constant 0 : index
    %1 = vector.load %arg2[%c0_1, %c0_2, %c0_3] : memref<1x16x64xf32, #tpu.memory_space<vmem>>, vector<1x16x64xf32>
    %2 = vector.shape_cast %1 : vector<1x16x64xf32> to vector<16x64xf32>
    %cst = arith.constant dense<0.000000e+00> : vector<8x64xf32>
    %3 = tpu.matmul %0, %2, %cst {dimension_numbers = #tpu.dot_dimension_numbers<[1], [0], [0], [1], [0, 0, 1, 1], [], []>} : vector<8x16xf32>, vector<16x64xf32>, vector<8x64xf32> -> vector<8x64xf32>
    %c0_4 = arith.constant 0 : index
    %c0_5 = arith.constant 0 : index
    %4 = vector.load %arg4[%c0_4, %c0_5] : memref<8x1xf32, #tpu.memory_space<vmem>>, vector<8x1xf32>
    %5 = vector.broadcast %4 : vector<8x1xf32> to vector<8x64xf32>
    %6 = arith.addf %3, %5 : vector<8x64xf32>
    %cst_6 = arith.constant 0.000000e+00 : f32
    %7 = vector.broadcast %cst_6 : f32 to vector<8x64xf32>
    %8 = arith.subf %7, %6 : vector<8x64xf32>
    %9 = math.exp %8 : vector<8x64xf32>
    %cst_7 = arith.constant 1.000000e+00 : f32
    %10 = vector.broadcast %cst_7 : f32 to vector<8x64xf32>
    %11 = arith.addf %10, %9 : vector<8x64xf32>
    %cst_8 = arith.constant 1.000000e+00 : f32
    %12 = vector.broadcast %cst_8 : f32 to vector<8x64xf32>
    %13 = arith.divf %12, %11 : vector<8x64xf32>
    %14 = arith.mulf %6, %13 : vector<8x64xf32>
    %c0_9 = arith.constant 0 : index
    %c0_10 = arith.constant 0 : index
    %c0_11 = arith.constant 0 : index
    %15 = vector.load %arg5[%c0_9, %c0_10, %c0_11] : memref<1x8x64xf32, #tpu.memory_space<vmem>>, vector<1x8x64xf32>
    %16 = vector.shape_cast %15 : vector<1x8x64xf32> to vector<8x64xf32>
    %17 = vector.shape_cast %14 : vector<8x64xf32> to vector<1x8x64xf32>
    tpu.vector_store %arg5[%c0_9, %c0_10, %c0_11], %17 {strides = array<i32>} : memref<1x8x64xf32, #tpu.memory_space<vmem>>, vector<1x8x64xf32>,
    return
  }
  func.func @transform_0(%arg0: i32, %arg1: i32) -> (i32, i32, i32) {
    %c0_i32 = arith.constant 0 : i32
    %c0_i32_0 = arith.constant 0 : i32
    return %arg0, %c0_i32, %arg1 : i32, i32, i32
  }
  func.func @transform_1(%arg0: i32, %arg1: i32) -> (i32, i32) {
    %c0_i32 = arith.constant 0 : i32
    %c0_i32_0 = arith.constant 0 : i32
    %c0_i32_1 = arith.constant 0 : i32
    return %c0_i32, %c0_i32_0 : i32, i32
  }
  func.func @transform_2(%arg0: i32, %arg1: i32) -> (i32, i32) {
    %c0_i32 = arith.constant 0 : i32
    %c0_i32_0 = arith.constant 0 : i32
    %c0_i32_1 = arith.constant 0 : i32
    return %c0_i32, %c0_i32_0 : i32, i32
  }
  func.func @transform_3(%arg0: i32, %arg1: i32) -> (i32, i32, i32) {
    %c0_i32 = arith.constant 0 : i32
    %c0_i32_0 = arith.constant 0 : i32
    return %arg0, %c0_i32, %arg1 : i32, i32, i32
  }
}

</mosaic_0001>

<bundles_post_ra>
// kernel: focus_forward.1
= control target key start
LH: loop header
LB: loop body
LE: loop exit
PB: predicated region body
PF: predicated region fallthrough
CT: control target
= control target key end

     0   :  { %s475_s12 = smov 0   ;;  %s477_s13 = smov 0   ;;  %s514_s0 = inlined_call_operand.vmem [shape: f32[2,16,64], index: 0, kind: input, shape index: {}]   ;;  %s515_s1 = inlined_call_operand.vmem [shape: f32[8,16], index: 1, kind: input, shape index: {}]   ;;  %s516_s2 = inlined_call_operand.vmem [shape: f32[8,1], index: 2, kind: input, shape index: {}]   ;;  %s517_s3 = inlined_call_operand.vmem [shape: f32[2,8,64], index: 3, kind: output, shape index: {}]  }
   0x1   :  { %s479_s14 = smov 0  }
   0x2 LB: > { %s25_s15 = sadd.s32 1, %s445_s13  ;;  %p373_p0 = scmp.ge.s32.totalorder %s449_s14, 1  ;;  %s449_s14 = sphi %s479_s14, %s13_s14   ;;  %s445_s13 = sphi %s477_s13, %s519_s13   ;;  %s441_s12 = sphi %s475_s12, %s518_s12  }
   0x3   : > { %p27_p1 = scmp.ge.s32.totalorder %s25_s15, 2  ;;  %p156_p2 = scmp.lt.s32.totalorder %s449_s14, 3 }
   0x5   : > { %s521_s15 = smov (%p27_p1, %s25_s15), 0  ;;  %p157_p3 = pnand %p373_p0, %p156_p2 }
   0x6   : > { %p185_p4 = scmp.lt.s32.totalorder (!%p157_p3), %s441_s12, 1  ;;  %v451_v0 = vmov (!%p157_p3), 0.0|0.0   ;;  %vm452_vm0 = vmmov (!%p157_p3), 0   ;;  %v453_v1 = vmov (!%p157_p3), 0.0   ;;  %v203_v2 = vld [vmem:[%s516_s2] sm:$0xff] (!%p157_p3)  ;;  %v454_v3 = vmov (!%p157_p3), 0  }
   0x7   : > { %160 = sbr.rel (%p157_p3) target bundleno = 268 (0x10c), region = 32  ;;  %391 = vmatprep.subr.bf16.mxu0 (!%p157_p3), %v451_v0  ;;  %388 = vmatprep.mubr.msk.f32.mxu0 (!%p157_p3), %vm452_vm0, %v453_v1  ;;  %v200_v7 = vld [vmem:[%s515_s1] sm:$0xff] (!%p157_p3)  ;;  %vm209_vm1 = vcmask (!%p157_p3), 130048   ;;  %vm290_vm2 = vcmask (!%p157_p3), 523264  }
   0x8   : > { %422 = vset.pattern.permute.xlu0 (!%p157_p3), %v454_v3 }
   0x9   : > { %206 = vperm.xlu0 (!%p157_p3), %422, %v203_v2  }
   0xe   : > { %s523_s12 = smov (!%p185_p4, %s441_s12), 1 }
   0xf   : > { %s380_s18 = sshll.u32 %s523_s12, 4  ;;  %s376_s24 = sshll.u32 %s523_s12, 3 }
  0x10   : > { %s192_s21 = scalar_lea.vmem %s514_s0, %s380_s18  ;;  %s199_s27 = scalar_lea.vmem %s517_s3, %s376_s24 }
  0x11   : > { %v201_v4 = vld [vmem:[%s192_s21] sm:$0xff]  ;;  %v202_v5 = vld [vmem:[%s192_s21 + $0x8] sm:$0xff] }
  0x12   : > { %v392_v6 = vpack.c.bf16 %v202_v5, %v201_v4 }
  0x14   : > { %393 = vmatpush3.bf16.msra.mxu0 %v392_v6 }
  0x17   : > { %389 = vmatmul.mubr.msk.f32.vlgmr.msra.gmra.mrb[0].mxu0 %vm209_vm1, %v200_v7 }
  0x88   : > { %v207_v8 = vpop.permute.xlu0 %206 }
  0xea   : > { %v279_v9 = vpop.f32.mrb[0].mxu0 }
  0xeb   : > { %v280_v10 = vadd.f32 %v279_v9, %v207_v8  ;;  %v390_v11 = vpop.f32.mrb[1].mxu0 }
  0xed   : > { %v283_v12 = vsub.f32 0.0, %v280_v10 }
  0xef   : > { %v284_v13 = vmul.f32 1.442695, %v283_v12 }
  0xf1   : > { %423 = vpow2.f32 %v284_v13 }
  0xfb   : > { %v424_v14 = vpop.eup %423 }
  0xfc   : > { %v286_v15 = vadd.f32 1.0, %v424_v14 }
  0xfe   : > { %425 = vrcp.f32 %v286_v15 }
 0x108   : > { %v426_v16 = vpop.eup %425 }
 0x109   : > { %v289_v17 = vmul.f32 %v426_v16, %v280_v10 }
 0x10b   : > { %291 = vst.msk [vmem:[%s199_s27] sm:$0xff] %vm290_vm2, %v289_v17 }
 0x10c PF: > { %s13_s14 = sadd.s32 1, %s449_s14   ;;  %s518_s12 = smov %s445_s13 }
 0x10d   : > { %p10_p5 = scmp.ge.s32.totalorder %s13_s14, 4   ;;  %s519_s13 = smov %s521_s15 }
 0x10f   :  { %12 = sbr.rel (!%p10_p5) target bundleno = 2 (0x2), region = 62 }

</bundles_post_ra>
